<compile_context>
chip_gen: v5e
topology: v5e:2x2
jax: 0.10.0
libtpu: 0.0.40
codegen_flags: <defaults>
</compile_context>

<pallas_src>
import functools

import jax
import jax.numpy as jnp
from jax.experimental import pallas as pl
from jax.experimental.pallas import tpu as pltpu  # noqa: F401  (TPU backend)

BN_EPS = 1e-5  # PyTorch BatchNorm1d default


def mlp_kernel(x_ref, w1_ref, w2_ref, p_ref, o_ref, *, hsize, osize, use_bf16_mxu):
    # x:  [B, isize]
    # w1: [isize, hsize]            (pre-transposed Linear1 weight, bias=False)
    # w2: [hsize, osize]            (pre-transposed Linear2 weight)
    # p:  [1, 2*hsize + osize]      = concat(gamma, beta, b2) along last dim
    x = x_ref[...]
    w1 = w1_ref[...]
    if use_bf16_mxu:
        x = x.astype(jnp.bfloat16)
        w1 = w1.astype(jnp.bfloat16)

    # Linear 1 (no bias) — MXU, f32 accumulation
    h = jnp.dot(x, w1, preferred_element_type=jnp.float32)

    # BatchNorm1d (training mode): batch mean, biased batch variance — f32.
    mean = jnp.mean(h, axis=0, keepdims=True)
    centered = h - mean
    var = jnp.mean(centered * centered, axis=0, keepdims=True)
    inv_std = jax.lax.rsqrt(var + BN_EPS)  # EUP slot

    # Static slices of the fused parameter slab (no extra DMAs).
    gamma = p_ref[:, 0:hsize]
    beta = p_ref[:, hsize : 2 * hsize]
    b2 = p_ref[:, 2 * hsize : 2 * hsize + osize]

    # Fold the affine: h_norm = h * scale + shift, then fuse ReLU.
    scale = inv_std * gamma                      # [1, hsize]
    shift = beta - mean * scale                  # [1, hsize]
    h_act = jnp.maximum(h * scale + shift, 0.0)  # one FMA + one max per element

    w2 = w2_ref[...]
    if use_bf16_mxu:
        h_act = h_act.astype(jnp.bfloat16)
        w2 = w2.astype(jnp.bfloat16)

    # Linear 2 (with bias) — MXU, f32 accumulation
    out = jnp.dot(h_act, w2, preferred_element_type=jnp.float32)
    o_ref[...] = (out + b2).astype(o_ref.dtype)


def mlp_forward(x, w1_t, gamma, beta, w2_t, b2, *, use_bf16_mxu=False):
    B, isize = x.shape
    hsize = w1_t.shape[1]
    osize = w2_t.shape[1]

    # Single parameter slab -> one DMA instead of three.
    params = jnp.concatenate(
        [gamma.reshape(1, hsize), beta.reshape(1, hsize), b2.reshape(1, osize)],
        axis=-1,
    )  # [1, 2*hsize + osize]

    # Small problem: single grid point, full-array blocks (block == full array,
    # so the (8,128) tiling constraint is satisfied by the full-extent rule).
    full = lambda shape: pl.BlockSpec(shape, lambda: tuple(0 for _ in shape))

    kernel = functools.partial(
        mlp_kernel, hsize=hsize, osize=osize, use_bf16_mxu=use_bf16_mxu
    )

    return pl.pallas_call(
        kernel,
        out_shape=jax.ShapeDtypeStruct((B, osize), jnp.float32),
        grid_spec=pl.GridSpec(
            grid=(),
            in_specs=[
                full((B, isize)),
                full((isize, hsize)),
                full((hsize, osize)),
                full((1, 2 * hsize + osize)),
            ],
            out_specs=full((B, osize)),
        ),
    )(x, w1_t, w2_t, params)


def reference_forward(x, w1_t, gamma, beta, w2_t, b2):
    h = x @ w1_t
    mean = h.mean(axis=0, keepdims=True)
    var = ((h - mean) ** 2).mean(axis=0, keepdims=True)
    h = (h - mean) / jnp.sqrt(var + BN_EPS) * gamma + beta
    h = jnp.maximum(h, 0.0)
    return h @ w2_t + b2


if __name__ == "__main__":
    # Small shapes implied by the MLP: batch=8, isize=32, hsize=64, osize=16
    B, isize, hsize, osize = 8, 32, 64, 16

    key = jax.random.PRNGKey(0)
    kx, k1, kg, kb, k2, kb2 = jax.random.split(key, 6)

    x = jax.random.normal(kx, (B, isize), dtype=jnp.float32)

    # Deterministic synthetic parameters (PyTorch-shaped, then transposed)
    w1 = jax.random.normal(k1, (hsize, isize), dtype=jnp.float32) * (1.0 / jnp.sqrt(isize))
    gamma = 1.0 + 0.1 * jax.random.normal(kg, (1, hsize), dtype=jnp.float32)
    beta = 0.1 * jax.random.normal(kb, (1, hsize), dtype=jnp.float32)
    w2 = jax.random.normal(k2, (osize, hsize), dtype=jnp.float32) * (1.0 / jnp.sqrt(hsize))
    b2 = 0.1 * jax.random.normal(kb2, (1, osize), dtype=jnp.float32)

    w1_t = w1.T  # [isize, hsize]
    w2_t = w2.T  # [hsize, osize]

    ref = reference_forward(x, w1_t, gamma, beta, w2_t, b2)

    # f32 path (exact-mode check)
    out = mlp_forward(x, w1_t, gamma, beta, w2_t, b2, use_bf16_mxu=False)
    out = jax.block_until_ready(out)
    assert out.shape == (B, osize)
    assert jnp.allclose(out, ref, atol=1e-4, rtol=1e-4), "f32 kernel mismatch vs reference"

    # bf16-MXU path (v6e/v7x throughput mode) — looser tolerance by design.
    out_bf16 = mlp_forward(x, w1_t, gamma, beta, w2_t, b2, use_bf16_mxu=True)
    out_bf16 = jax.block_until_ready(out_bf16)
    assert out_bf16.shape == (B, osize)
    assert jnp.allclose(out_bf16, ref, atol=1e-1, rtol=1e-1), "bf16 kernel mismatch vs reference"

    print("KERNEL_OK")
</pallas_src>

<mosaic_0001>
module attributes {stable_mosaic.version = 11 : i64} {
  func.func @mlp_kernel(%arg0: memref<8x32xf32, #tpu.memory_space<vmem>>, %arg1: memref<32x64xf32, #tpu.memory_space<vmem>>, %arg2: memref<64x16xf32, #tpu.memory_space<vmem>>, %arg3: memref<1x144xf32, #tpu.memory_space<vmem>>, %arg4: memref<8x16xf32, #tpu.memory_space<vmem>>) attributes {dimension_semantics = [], scalar_prefetch = 0 : i64, scratch_operands = 0 : i64, tpu.core_type = #tpu.core_type<tc>} {
    %c0 = arith.constant 0 : index
    %c0_0 = arith.constant 0 : index
    %0 = vector.load %arg0[%c0, %c0_0] : memref<8x32xf32, #tpu.memory_space<vmem>>, vector<8x32xf32>
    %c0_1 = arith.constant 0 : index
    %c0_2 = arith.constant 0 : index
    %1 = vector.load %arg1[%c0_1, %c0_2] : memref<32x64xf32, #tpu.memory_space<vmem>>, vector<32x64xf32>
    %cst = arith.constant dense<0.000000e+00> : vector<8x64xf32>
    %2 = tpu.matmul %0, %1, %cst {dimension_numbers = #tpu.dot_dimension_numbers<[1], [0], [0], [1], [0, 0, 1, 1], [], []>} : vector<8x32xf32>, vector<32x64xf32>, vector<8x64xf32> -> vector<8x64xf32>
    %cst_3 = arith.constant dense<0.000000e+00> : vector<64xf32>
    %3 = vector.multi_reduction <add>, %2, %cst_3 [0] : vector<8x64xf32> to vector<64xf32>
    %4 = vector.shape_cast %3 : vector<64xf32> to vector<1x64xf32>
    %cst_4 = arith.constant 8.000000e+00 : f32
    %5 = vector.broadcast %cst_4 : f32 to vector<1x64xf32>
    %6 = arith.divf %4, %5 : vector<1x64xf32>
    %7 = vector.broadcast %6 : vector<1x64xf32> to vector<8x64xf32>
    %8 = arith.subf %2, %7 : vector<8x64xf32>
    %9 = arith.mulf %8, %8 : vector<8x64xf32>
    %cst_5 = arith.constant dense<0.000000e+00> : vector<64xf32>
    %10 = vector.multi_reduction <add>, %9, %cst_5 [0] : vector<8x64xf32> to vector<64xf32>
    %11 = vector.shape_cast %10 : vector<64xf32> to vector<1x64xf32>
    %cst_6 = arith.constant 8.000000e+00 : f32
    %12 = vector.broadcast %cst_6 : f32 to vector<1x64xf32>
    %13 = arith.divf %11, %12 : vector<1x64xf32>
    %cst_7 = arith.constant 9.99999974E-6 : f32
    %14 = vector.broadcast %cst_7 : f32 to vector<1x64xf32>
    %15 = arith.addf %13, %14 : vector<1x64xf32>
    %16 = math.rsqrt %15 : vector<1x64xf32>
    %c0_8 = arith.constant 0 : index
    %c0_9 = arith.constant 0 : index
    %17 = vector.load %arg3[%c0_8, %c0_9] : memref<1x144xf32, #tpu.memory_space<vmem>>, vector<1x64xf32>
    %c0_10 = arith.constant 0 : index
    %c64 = arith.constant 64 : index
    %18 = vector.load %arg3[%c0_10, %c64] : memref<1x144xf32, #tpu.memory_space<vmem>>, vector<1x64xf32>
    %c0_11 = arith.constant 0 : index
    %c128 = arith.constant 128 : index
    %19 = vector.load %arg3[%c0_11, %c128] : memref<1x144xf32, #tpu.memory_space<vmem>>, vector<1x16xf32>
    %20 = arith.mulf %16, %17 : vector<1x64xf32>
    %21 = arith.mulf %6, %20 : vector<1x64xf32>
    %22 = arith.subf %18, %21 : vector<1x64xf32>
    %23 = vector.broadcast %20 : vector<1x64xf32> to vector<8x64xf32>
    %24 = arith.mulf %2, %23 : vector<8x64xf32>
    %25 = vector.broadcast %22 : vector<1x64xf32> to vector<8x64xf32>
    %26 = arith.addf %24, %25 : vector<8x64xf32>
    %cst_12 = arith.constant 0.000000e+00 : f32
    %27 = vector.broadcast %cst_12 : f32 to vector<8x64xf32>
    %28 = arith.maximumf %26, %27 : vector<8x64xf32>
    %c0_13 = arith.constant 0 : index
    %c0_14 = arith.constant 0 : index
    %29 = vector.load %arg2[%c0_13, %c0_14] : memref<64x16xf32, #tpu.memory_space<vmem>>, vector<64x16xf32>
    %cst_15 = arith.constant dense<0.000000e+00> : vector<8x16xf32>
    %30 = tpu.matmul %28, %29, %cst_15 {dimension_numbers = #tpu.dot_dimension_numbers<[1], [0], [0], [1], [0, 0, 1, 1], [], []>} : vector<8x64xf32>, vector<64x16xf32>, vector<8x16xf32> -> vector<8x16xf32>
    %31 = vector.broadcast %19 : vector<1x16xf32> to vector<8x16xf32>
    %32 = arith.addf %30, %31 : vector<8x16xf32>
    %c0_16 = arith.constant 0 : index
    %c0_17 = arith.constant 0 : index
    %33 = vector.load %arg4[%c0_16, %c0_17] : memref<8x16xf32, #tpu.memory_space<vmem>>, vector<8x16xf32>
    tpu.vector_store %arg4[%c0_16, %c0_17], %32 {strides = array<i32>} : memref<8x16xf32, #tpu.memory_space<vmem>>, vector<8x16xf32>,
    return
  }
}

</mosaic_0001>

<bundles_post_ra>
// kernel: tpu_custom_call.1
= control target key start
LH: loop header
LB: loop body
LE: loop exit
PB: predicated region body
PF: predicated region fallthrough
CT: control target
= control target key end

     0   :  { %s269_s0 = inlined_call_operand.vmem [shape: f32[8,32], index: 0, kind: input, shape index: {}]   ;;  %s270_s1 = inlined_call_operand.vmem [shape: f32[32,64], index: 1, kind: input, shape index: {}]   ;;  %s271_s2 = inlined_call_operand.vmem [shape: f32[64,16], index: 2, kind: input, shape index: {}]   ;;  %s272_s3 = inlined_call_operand.vmem [shape: f32[1,144], index: 3, kind: input, shape index: {}]   ;;  %s273_s4 = inlined_call_operand.hbm [shape: f32[8,16], index: 4, kind: output, shape index: {}]  }
   0x1   :  { %v22_v0 = vld [vmem:[%s270_s1 + $0x18] sm:$0xff]  ;;  %v21_v1 = vld [vmem:[%s270_s1 + $0x10] sm:$0xff]  ;;  %v20_v2 = vld [vmem:[%s270_s1 + $0x8] sm:$0xff] }
   0x2   :  { %39 = vmatpush.msra.mxu0 %v22_v0 }
   0x3   :  { %9 = vsyncpa [#allocation3], 0  ;;  %v19_v3 = vld [vmem:[%s270_s1] sm:$0xff]  ;;  %vm23_vm0 = vcmask 261120   ;;  %v190_v5 = vmov 8.0   ;;  %vm47_vm1 = vcmask 523264  }
   0x4   :  { %40 = vmatpush.msra.mxu0 %v21_v1  ;;  %v18_v4 = vld [vmem:[%s269_s0] sm:$0xff]  ;;  %160 = vrcp.f32 %v190_v5  ;;  %s191_s25 = smov 64   ;;  %v109_v44 = vld [vmem:[%s271_s2 + $0x38] sm:$0xff]  ;;  %v108_v45 = vld [vmem:[%s271_s2 + $0x30] sm:$0xff]  ;;  %s192_s18 = smov [#allocation2]   ;;  %vm136_vm6 = vcmask 130048  }
   0x5   :  { %v84_v38 = vld [vmem:[%s272_s3] sm:$0x1]  ;;  %124 = vmatpush.msra.mxu1 %v109_v44  ;;  %v107_v46 = vld [vmem:[%s271_s2 + $0x28] sm:$0xff]  ;;  %v105_v48 = vld [vmem:[%s271_s2 + $0x18] sm:$0xff]  ;;  %s143_s19 = sshll.u32 %s192_s18, 4  ;;  %s145_s22 = sshll.u32 %s273_s4, 4  ;;  %s144_s19 = int_to_ptr.vmem [resolvable:$true] %s143_s19  ;;  %s146_s22 = int_to_ptr.hbm [resolvable:$true] %s145_s22 }
   0x6   :  { %41 = vmatpush.msra.mxu0 %v20_v2  ;;  %v106_v47 = vld [vmem:[%s271_s2 + $0x20] sm:$0xff]  ;;  %v104_v49 = vld [vmem:[%s271_s2 + $0x10] sm:$0xff]  ;;  %v103_v53 = vld [vmem:[%s271_s2 + $0x8] sm:$0xff] }
   0x7   :  { %125 = vmatpush.msra.mxu1 %v108_v45  ;;  %v102_v54 = vld [vmem:[%s271_s2] sm:$0xff] }
   0x8   :  { %42 = vmatpush.msra.mxu0 %v19_v3  ;;  %v159_v58 = vld [vmem:[%s272_s3 + $0x1] ss:$0 sm:$0xff] }
   0x9   :  { %154 = vmatmul.msk.f32.vlgmr.msra.gmra.mxu0 %vm23_vm0, %v18_v4  ;;  %126 = vmatpush.msra.mxu1 %v107_v46 }
   0xa   :  { %v161_v6 = vpop.eup %160 }
   0xb   :  { %v56_v7 = vmul.f32 8.0, %v161_v6  ;;  %vm60_vm2 = vweird.f32 %v161_v6  ;;  %127 = vmatpush.msra.mxu1 %v106_v47 }
   0xd   :  { %v57_v8 = vsub.f32 1.0, %v56_v7  ;;  %128 = vmatpush.msra.mxu1 %v105_v48 }
   0xf   :  { %v58_v12 = vmul.f32 %v161_v6, %v57_v8  ;;  %129 = vmatpush.msra.mxu1 %v104_v49 }
  0x11   :  { %v59_v15 = vadd.f32 %v161_v6, %v58_v12  ;;  %130 = vmatpush.msra.mxu1 %v103_v53 }
  0x13   :  { %v61_v18 = vsel %vm60_vm2, %v161_v6, %v59_v15  ;;  %131 = vmatpush.msra.mxu1 %v102_v54 }
  0x86   :  { %v44_v9 = vpop.f32.mrf.mxu0 }
  0x87   :  { %v48_v10 = vsel %vm47_vm1, %v44_v9, 0.0 }
  0x88   :  { %v49_v11 = vrot.slane %v48_v10, 4 }
  0x8a   :  { %v50_v13 = vadd.f32 %v49_v11, %v48_v10 }
  0x8c   :  { %v51_v14 = vrot.slane %v50_v13, 2 }
  0x8e   :  { %v52_v16 = vadd.f32 %v51_v14, %v50_v13 }
  0x90   :  { %v53_v17 = vrot.slane %v52_v16, 1 }
  0x92   :  { %v54_v19 = vadd.f32 %v53_v17, %v52_v16 }
  0x94   :  { %v62_v20 = vmul.f32 %v61_v18, %v54_v19 }
  0x96   :  { %v63_v21 = vsub.f32 %v44_v9, %v62_v20 }
  0x98   :  { %v64_v22 = vmul.f32 %v63_v21, %v63_v21 }
  0x9a   :  { %v65_v23 = vsel %vm47_vm1, %v64_v22, 0.0 }
  0x9b   :  { %v66_v24 = vrot.slane %v65_v23, 4 }
  0x9d   :  { %v67_v25 = vadd.f32 %v66_v24, %v65_v23 }
  0x9f   :  { %v68_v26 = vrot.slane %v67_v25, 2 }
  0xa1   :  { %v69_v27 = vadd.f32 %v68_v26, %v67_v25 }
  0xa3   :  { %v70_v28 = vrot.slane %v69_v27, 1 }
  0xa5   :  { %v71_v29 = vadd.f32 %v70_v28, %v69_v27 }
  0xa7   :  { %v72_v30 = vmul.f32 %v71_v29, %v61_v18 }
  0xa9   :  { %v73_v31 = vadd.f32 1e-05, %v72_v30 }
  0xab   :  { %162 = vrsqrt.f32 %v73_v31  ;;  %vm80_vm4 = vweird.f32 %v73_v31 }
  0xb1   :  { %v163_v32 = vpop.eup %162 }
  0xb2   :  { %v75_v33 = vmul.f32 %v163_v32, %v73_v31  ;;  %vm81_vm3 = vweird.f32 %v163_v32 }
  0xb3   :  { %vm82_vm5 = vmor %vm80_vm4, %vm81_vm3 }
  0xb4   :  { %v76_v34 = vmul.f32 %v163_v32, %v75_v33 }
  0xb6   :  { %v77_v35 = vmul.f32 0.5, %v76_v34 }
  0xb8   :  { %v78_v36 = vsub.f32 1.5, %v77_v35 }
  0xba   :  { %v79_v37 = vmul.f32 %v163_v32, %v78_v36 }
  0xbc   :  { %v83_v39 = vsel %vm82_vm5, %v163_v32, %v79_v37 }
  0xbd   :  { %v86_v40 = vmul.f32 %v84_v38, %v83_v39 }
  0xbf   :  { %v93_v41 = vperm.slane %v86_v40, 0  ;;  %v87_v42 = vmul.f32 %v86_v40, %v62_v20 }
  0xc1   :  { %v94_v43 = vmul.f32 %v93_v41, %v44_v9  ;;  %89 = vrot.lane.b32.xlu0 %v87_v42, %s191_s25 }
 0x133   :  { %v90_v50 = vpop.permute.xlu0 %89 }
 0x134   :  { %v92_v51 = vsub.f32 %v84_v38, %v90_v50 }
 0x136   :  { %v96_v52 = vperm.slane %v92_v51, 0 }
 0x138   :  { %97 = vrot.lane.b32.xlu0 %v96_v52, %s191_s25 }
 0x1aa   :  { %v98_v55 = vpop.permute.xlu0 %97 }
 0x1ab   :  { %v100_v56 = vadd.f32 %v98_v55, %v94_v43 }
 0x1ad   :  { %v101_v57 = vmax.f32 %v100_v56, 0.0 }
 0x1af   :  { %155 = vmatmul.msk.f32.vlgmr.msra.gmra.mxu1 %vm47_vm1, %v101_v57 }
 0x22c   :  { %v133_v59 = vpop.f32.mrf.mxu1 }
 0x22d   :  { %v134_v60 = vadd.f32 %v159_v58, %v133_v59 }
 0x22f   :  { %137 = vst.msk [vmem:[#allocation2] sm:$0xff] %vm136_vm6, %v134_v60 }
 0x230   :  { %148 = dma.vmem_to_hbm [thread:$0]  %s144_s19, 128, %s146_s22, [#allocation3]  }
 0x231   :  { %188 = dma.done.wait [#allocation3], 128  }
 0x232   :  { %189 = vsyncadd [#allocation3], 4294967168 }
 0x233   :  { %153 = vsyncpa [#allocation3], 1 }

</bundles_post_ra>
